<compile_context>
chip_gen: v6e
topology: v6e:2x2x1
jax: 0.10.0
libtpu: 0.0.40
codegen_flags: <defaults>
</compile_context>

<pallas_src>
import numpy as np
import jax
import jax.numpy as jnp
from jax.experimental import pallas as pl
from jax.experimental.pallas import tpu as pltpu


# ----------------------------------------------------------------------------
# Bilinear interpolation factors (exact PyTorch align_corners=False semantics)
# ----------------------------------------------------------------------------
def _bilinear_matrix_1d(in_size: int, out_size: int) -> np.ndarray:
    """[out_size, in_size] 1-D bilinear interpolation matrix."""
    A = np.zeros((out_size, in_size), dtype=np.float32)
    scale = in_size / out_size
    for i in range(out_size):
        src = max((i + 0.5) * scale - 0.5, 0.0)
        i0 = min(int(np.floor(src)), in_size - 1)
        i1 = min(i0 + 1, in_size - 1)
        w = src - i0
        A[i, i0] += 1.0 - w
        A[i, i1] += w
    return A


def build_interp_mats(hw8, hw16, hw32, out_hw, num_classes):
    """Separable upsample factors.

    AwK* = kron(Aw^T, I_K) applies the width interpolation on the right of an
    (H, W*K) array (class index K folded into the lane dimension), so every
    bilinear upsample is two plain 2-D matmuls and memory stays bounded.
    """
    H8, W8 = hw8
    H16, W16 = hw16
    H32, W32 = hw32
    Ho, Wo = out_hw
    K = num_classes

    Ah32 = _bilinear_matrix_1d(H32, H16)
    Aw32 = _bilinear_matrix_1d(W32, W16)
    Ah16 = _bilinear_matrix_1d(H16, H8)
    Aw16 = _bilinear_matrix_1d(W16, W8)
    Ah8 = _bilinear_matrix_1d(H8, Ho)
    Aw8 = _bilinear_matrix_1d(W8, Wo)

    eyeK = np.eye(K, dtype=np.float32)
    mats = {
        "Ah32": Ah32, "Aw32": Aw32,
        "Ah16": Ah16, "Aw16": Aw16,
        "Ah8": Ah8, "Aw8": Aw8,
        "AwK32": np.kron(Aw32.T, eyeK),   # [W32*K, W16*K]
        "AwK16": np.kron(Aw16.T, eyeK),   # [W16*K, W8*K ]
        "AwK8":  np.kron(Aw8.T,  eyeK),   # [W8*K,  Wo*K ]
    }
    # Power-of-two upsample factors -> weights (k/2, k/8) are exact in bf16.
    return {k: jnp.asarray(v, dtype=jnp.bfloat16) for k, v in mats.items()}


def _pick_row_tile(h_out: int, target: int) -> int:
    """Largest multiple of 8 that divides h_out and is <= target (else h_out)."""
    cands = [t for t in range(8, h_out + 1, 8) if h_out % t == 0 and t <= target]
    return max(cands) if cands else h_out


# ----------------------------------------------------------------------------
# Kernel 1: per-batch skip fusion + reassociated width-upsample (once per n).
#   q16 = p16 + (Ah32 @ p32) @ AwK32
#   q8  = p8  + (Ah16 @ q16) @ AwK16
#   r8  = q8 @ AwK8            -> bf16 [H8, Wo*K]
# Pure chain of 2-D matmuls, bf16 operands, f32 accumulation, no reshapes.
# ----------------------------------------------------------------------------
def _fuse_kernel(p8_ref, p16_ref, p32_ref,
                 ah32_ref, awk32_ref, ah16_ref, awk16_ref, awk8_ref,
                 r8_ref):
    def mm(a, b):
        # bf16 operands, f32 accumulation.  (If tighter accuracy were needed,
        # keep the left operand f32 and only cast the static interp matrices.)
        return jnp.dot(a.astype(jnp.bfloat16), b.astype(jnp.bfloat16),
                       preferred_element_type=jnp.float32)

    q16 = p16_ref[...].astype(jnp.float32) + mm(
        mm(ah32_ref[...], p32_ref[...]), awk32_ref[...])
    q8 = p8_ref[...].astype(jnp.float32) + mm(
        mm(ah16_ref[...], q16), awk16_ref[...])
    r8_ref[...] = mm(q8, awk8_ref[...]).astype(r8_ref.dtype)


# ----------------------------------------------------------------------------
# Kernel 2: x8 row upsample, tiled over output rows.  out[tile] = Ah8[tile]@r8
# Lane-dense [TH, Wo*K] output stores; both grid axes "parallel".
# ----------------------------------------------------------------------------
def _row_upsample_kernel(r8_ref, ah8_ref, out_ref):
    out_ref[...] = jnp.dot(ah8_ref[...], r8_ref[...],
                           preferred_element_type=jnp.float32
                           ).astype(out_ref.dtype)


# ----------------------------------------------------------------------------
# Wrapper around the two pallas_calls
# ----------------------------------------------------------------------------
def fcn8_head_pallas(p8d, p16d, p32d, mats,
                     hw8, hw16, hw32, out_hw, num_classes,
                     row_tile_target=256, out_dtype=jnp.float32):
    """p{s}d: [N, H_s, W_s*K] bf16 (lane-dense prediction maps).

    Returns logits [N, Ho, Wo*K] in out_dtype.
    """
    N = p8d.shape[0]
    H8, W8 = hw8
    H16, W16 = hw16
    H32, W32 = hw32
    Ho, Wo = out_hw
    K = num_classes
    W32K, W16K, W8K, WoK = W32 * K, W16 * K, W8 * K, Wo * K

    Ah32, AwK32 = mats["Ah32"], mats["AwK32"]
    Ah16, AwK16 = mats["Ah16"], mats["AwK16"]
    Ah8, AwK8 = mats["Ah8"], mats["AwK8"]

    # ---- Kernel 1: per-batch fuse + q8 @ AwK8 (reassociated) ----------------
    def const2(a):
        return pl.BlockSpec(a.shape, lambda n: (0, 0))

    fuse_flops = 2 * N * (H16 * H32 * W32K + H16 * W32K * W16K
                          + H8 * H16 * W16K + H8 * W16K * W8K
                          + H8 * W8K * WoK)
    fuse_bytes = (2 * (p8d.size + p16d.size + p32d.size)
                  + 2 * (Ah32.size + AwK32.size + Ah16.size + AwK16.size
                         + AwK8.size)
                  + 2 * N * H8 * WoK)

    r8 = pl.pallas_call(
        _fuse_kernel,
        out_shape=jax.ShapeDtypeStruct((N, H8, WoK), jnp.bfloat16),
        grid_spec=pltpu.PrefetchScalarGridSpec(
            num_scalar_prefetch=0,
            grid=(N,),
            in_specs=[pl.BlockSpec((None, H8, W8K), lambda n: (n, 0, 0)),
                      pl.BlockSpec((None, H16, W16K), lambda n: (n, 0, 0)),
                      pl.BlockSpec((None, H32, W32K), lambda n: (n, 0, 0)),
                      const2(Ah32), const2(AwK32),
                      const2(Ah16), const2(AwK16),
                      const2(AwK8)],
            out_specs=pl.BlockSpec((None, H8, WoK), lambda n: (n, 0, 0))),
        compiler_params=pltpu.CompilerParams(
            dimension_semantics=("parallel",),
            vmem_limit_bytes=32 * 1024 * 1024),
        cost_estimate=pl.CostEstimate(flops=int(fuse_flops), transcendentals=0,
                                      bytes_accessed=int(fuse_bytes)),
    )(p8d, p16d, p32d, Ah32, AwK32, Ah16, AwK16, AwK8)

    # ---- Kernel 2: tiled x8 row upsample, out = Ah8_tile @ r8 ---------------
    TH = _pick_row_tile(Ho, row_tile_target)
    T = Ho // TH
    out_bytes = jnp.dtype(out_dtype).itemsize

    up_flops = 2 * N * Ho * H8 * WoK
    up_bytes = (2 * N * H8 * WoK          # r8 read (once per batch; t-invariant block)
                + 2 * N * Ho * H8          # Ah8 row tiles
                + out_bytes * N * Ho * WoK)  # output writeback (dominant term)

    out_flat = pl.pallas_call(
        _row_upsample_kernel,
        out_shape=jax.ShapeDtypeStruct((N, Ho, WoK), out_dtype),
        grid_spec=pltpu.PrefetchScalarGridSpec(
            num_scalar_prefetch=0,
            grid=(N, T),
            in_specs=[pl.BlockSpec((None, H8, WoK), lambda n, t: (n, 0, 0)),
                      pl.BlockSpec((TH, H8), lambda n, t: (t, 0))],
            out_specs=pl.BlockSpec((None, TH, WoK), lambda n, t: (n, t, 0))),
        compiler_params=pltpu.CompilerParams(
            dimension_semantics=("parallel", "parallel"),
            vmem_limit_bytes=48 * 1024 * 1024),
        cost_estimate=pl.CostEstimate(flops=int(up_flops), transcendentals=0,
                                      bytes_accessed=int(up_bytes)),
    )(r8, Ah8)
    return out_flat


# ----------------------------------------------------------------------------
# Synthetic backbone stand-in.
# TODO(synk): the real FCN8 wraps an injected torch backbone and captures the
# stride-8/16/32 intermediate layers with forward hooks (CaptureOutput); that
# has no Pallas equivalent, so a deterministic plain-JAX stand-in produces the
# multi-scale feature maps here.
# ----------------------------------------------------------------------------
def synthetic_backbone(x_nchw, proj_params):
    feats = {}
    N, C, H, W = x_nchw.shape
    for stride, (w, b) in proj_params.items():
        pooled = x_nchw.reshape(N, C, H // stride, stride, W // stride, stride)
        pooled = pooled.mean(axis=(3, 5))
        feat = jnp.einsum('nchw,ck->nkhw', pooled, w) + b[None, :, None, None]
        feats[stride] = jnp.maximum(feat, 0.0)
    return feats


def fcn8_forward(x_nchw, backbone_proj, cls_params, num_classes,
                 row_tile_target=256):
    feats = synthetic_backbone(x_nchw, backbone_proj)   # NCHW features

    def flat_nhwc(f):
        n, c, h, w = f.shape
        return jnp.transpose(f, (0, 2, 3, 1)).reshape(n, h * w, c), (h, w)

    f8, hw8 = flat_nhwc(feats[8])
    f16, hw16 = flat_nhwc(feats[16])
    f32, hw32 = flat_nhwc(feats[32])
    out_hw = (hw8[0] * 8, hw8[1] * 8)
    N = x_nchw.shape[0]
    K = num_classes

    # bf16 operands; all matmuls accumulate in f32.
    f8b = f8.astype(jnp.bfloat16)
    f16b = f16.astype(jnp.bfloat16)
    f32b = f32.astype(jnp.bfloat16)
    w8, b8, w16, b16, w32, b32 = cls_params
    cls_b = (w8.astype(jnp.bfloat16), b8, w16.astype(jnp.bfloat16), b16,
             w32.astype(jnp.bfloat16), b32)

    # 1x1-conv classifiers: tiny [HW, C] @ [C, K] GEMMs (MXU N=K=5, masked
    # lane stores) — deliberately left to XLA, fused with the de-interleave
    # reshape [N,H*W,K] -> [N,H,W*K] and the bf16 cast, so the prediction maps
    # never round-trip HBM in f32 and there is no extra Pallas launch.
    def classify(f, w, b, hw):
        p = jnp.dot(f, w, preferred_element_type=jnp.float32) + b
        return p.reshape(N, hw[0], hw[1] * K).astype(jnp.bfloat16)

    wb8, bb8, wb16, bb16, wb32, bb32 = cls_b
    p8d = classify(f8b, wb8, bb8, hw8)
    p16d = classify(f16b, wb16, bb16, hw16)
    p32d = classify(f32b, wb32, bb32, hw32)

    mats = build_interp_mats(hw8, hw16, hw32, out_hw, num_classes)

    out_flat = fcn8_head_pallas(p8d, p16d, p32d, mats,
                                hw8, hw16, hw32, out_hw, num_classes,
                                row_tile_target=row_tile_target,
                                out_dtype=jnp.float32)

    out = out_flat.reshape(N, out_hw[0], out_hw[1], num_classes)
    out = jnp.transpose(out, (0, 3, 1, 2))   # back to NCHW, as torch returns
    return out, (f8b, f16b, f32b), cls_b, mats, (hw8, hw16, hw32, out_hw)


# ----------------------------------------------------------------------------
# Pure-JAX reference of the head math (from the same bf16 inputs), f32 compute.
# ----------------------------------------------------------------------------
def _head_reference(f8, f16, f32, cls_params, mats, shapes):
    hw8, hw16, hw32, _ = shapes
    w8, b8, w16, b16, w32, b32 = cls_params

    def cls(f, w, b, hw):
        p = jnp.dot(f.astype(jnp.float32), w.astype(jnp.float32)) + b.astype(jnp.float32)
        return p.reshape(p.shape[0], hw[0], hw[1], -1)

    def up(p, Ah, Aw):
        p = jnp.einsum('oh,nhwk->nowk', Ah.astype(jnp.float32), p)
        return jnp.einsum('pw,nhwk->nhpk', Aw.astype(jnp.float32), p)

    p8 = cls(f8, w8, b8, hw8)
    p16 = cls(f16, w16, b16, hw16)
    p32 = cls(f32, w32, b32, hw32)
    p16 = p16 + up(p32, mats["Ah32"], mats["Aw32"])
    p8 = p8 + up(p16, mats["Ah16"], mats["Aw16"])
    out = up(p8, mats["Ah8"], mats["Aw8"])               # [N, Ho, Wo, K]
    return jnp.transpose(out, (0, 3, 1, 2))


if __name__ == "__main__":
    # Small deterministic setup: batch=2, in_channels=3, spatial=64x64,
    # backbone channels (C8, C16, C32) = (8, 16, 32), num_classes=5.
    N, Cin, H, W = 2, 3, 64, 64
    C8, C16, C32 = 8, 16, 32
    K = 5

    key = jax.random.PRNGKey(0)
    ks = jax.random.split(key, 16)

    x = jax.random.normal(ks[0], (N, Cin, H, W), dtype=jnp.float32)

    backbone_proj = {
        8:  (0.1 * jax.random.normal(ks[1], (Cin, C8), jnp.float32),
             0.1 * jax.random.normal(ks[2], (C8,), jnp.float32)),
        16: (0.1 * jax.random.normal(ks[3], (Cin, C16), jnp.float32),
             0.1 * jax.random.normal(ks[4], (C16,), jnp.float32)),
        32: (0.1 * jax.random.normal(ks[5], (Cin, C32), jnp.float32),
             0.1 * jax.random.normal(ks[6], (C32,), jnp.float32)),
    }

    # Classifier (1x1 Conv2d) params in channels-last matmul form: [C, K], [1, K].
    cls_params = (
        0.1 * jax.random.normal(ks[7], (C8, K), jnp.float32),
        0.1 * jax.random.normal(ks[8], (1, K), jnp.float32),
        0.1 * jax.random.normal(ks[9], (C16, K), jnp.float32),
        0.1 * jax.random.normal(ks[10], (1, K), jnp.float32),
        0.1 * jax.random.normal(ks[11], (C32, K), jnp.float32),
        0.1 * jax.random.normal(ks[12], (1, K), jnp.float32),
    )

    # row_tile_target=16 exercises several output-row tiles at this toy 64x64
    # output; production resolutions would use 256-512 (128/256 on v7x only if
    # the resident AwK8 + output tile would exceed ~48 MiB of VMEM).
    out, feats_b, cls_b, mats, shapes = fcn8_forward(
        x, backbone_proj, cls_params, K, row_tile_target=16)
    out = jax.block_until_ready(out)
    assert out.shape == (N, K, H, W), out.shape

    # Cross-check the Pallas kernels against a plain-JAX reference of the head.
    # (bf16 operands with f32 accumulation -> loosened tolerance.)
    ref = _head_reference(*feats_b, cls_b, mats, shapes)
    np.testing.assert_allclose(np.asarray(out), np.asarray(ref),
                               rtol=2e-2, atol=2e-2)

    print("KERNEL_OK")
</pallas_src>

<mosaic_0001>
module attributes {stable_mosaic.version = 11 : i64} {
  func.func @_fuse_kernel(%arg0: i32, %arg1: memref<1x8x40xbf16, #tpu.memory_space<vmem>>, %arg2: memref<1x4x20xbf16, #tpu.memory_space<vmem>>, %arg3: memref<1x2x10xbf16, #tpu.memory_space<vmem>>, %arg4: memref<4x2xbf16, #tpu.memory_space<vmem>>, %arg5: memref<10x20xbf16, #tpu.memory_space<vmem>>, %arg6: memref<8x4xbf16, #tpu.memory_space<vmem>>, %arg7: memref<20x40xbf16, #tpu.memory_space<vmem>>, %arg8: memref<40x320xbf16, #tpu.memory_space<vmem>>, %arg9: memref<1x8x320xbf16, #tpu.memory_space<vmem>>) attributes {dimension_semantics = [#tpu.dimension_semantics<parallel>], iteration_bounds = array<i64: 2>, scalar_prefetch = 0 : i64, scratch_operands = 0 : i64, tpu.core_type = #tpu.core_type<tc>, window_params = [{transform_indices = @transform_0, window_bounds = array<i64: 1, 8, 40>}, {transform_indices = @transform_1, window_bounds = array<i64: 1, 4, 20>}, {transform_indices = @transform_2, window_bounds = array<i64: 1, 2, 10>}, {pipeline_mode = #tpu.pipeline_mode<synchronous>, transform_indices = @transform_3, window_bounds = array<i64: 4, 2>}, {pipeline_mode = #tpu.pipeline_mode<synchronous>, transform_indices = @transform_4, window_bounds = array<i64: 10, 20>}, {pipeline_mode = #tpu.pipeline_mode<synchronous>, transform_indices = @transform_5, window_bounds = array<i64: 8, 4>}, {pipeline_mode = #tpu.pipeline_mode<synchronous>, transform_indices = @transform_6, window_bounds = array<i64: 20, 40>}, {pipeline_mode = #tpu.pipeline_mode<synchronous>, transform_indices = @transform_7, window_bounds = array<i64: 40, 320>}, {transform_indices = @transform_8, window_bounds = array<i64: 1, 8, 320>}]} {
    %c0 = arith.constant 0 : index
    %c0_0 = arith.constant 0 : index
    %c0_1 = arith.constant 0 : index
    %0 = vector.load %arg2[%c0, %c0_0, %c0_1] : memref<1x4x20xbf16, #tpu.memory_space<vmem>>, vector<1x4x20xbf16>
    %1 = vector.shape_cast %0 : vector<1x4x20xbf16> to vector<4x20xbf16>
    %2 = arith.extf %1 : vector<4x20xbf16> to vector<4x20xf32>
    %c0_2 = arith.constant 0 : index
    %c0_3 = arith.constant 0 : index
    %3 = vector.load %arg4[%c0_2, %c0_3] : memref<4x2xbf16, #tpu.memory_space<vmem>>, vector<4x2xbf16>
    %c0_4 = arith.constant 0 : index
    %c0_5 = arith.constant 0 : index
    %c0_6 = arith.constant 0 : index
    %4 = vector.load %arg3[%c0_4, %c0_5, %c0_6] : memref<1x2x10xbf16, #tpu.memory_space<vmem>>, vector<1x2x10xbf16>
    %5 = vector.shape_cast %4 : vector<1x2x10xbf16> to vector<2x10xbf16>
    %cst = arith.constant dense<0.000000e+00> : vector<4x10xf32>
    %6 = tpu.matmul %3, %5, %cst {dimension_numbers = #tpu.dot_dimension_numbers<[1], [0], [0], [1], [0, 0, 1, 1], [], []>} : vector<4x2xbf16>, vector<2x10xbf16>, vector<4x10xf32> -> vector<4x10xf32>
    %c0_7 = arith.constant 0 : index
    %c0_8 = arith.constant 0 : index
    %7 = vector.load %arg5[%c0_7, %c0_8] : memref<10x20xbf16, #tpu.memory_space<vmem>>, vector<10x20xbf16>
    %8 = arith.truncf %6 : vector<4x10xf32> to vector<4x10xbf16>
    %cst_9 = arith.constant dense<0.000000e+00> : vector<4x20xf32>
    %9 = tpu.matmul %8, %7, %cst_9 {dimension_numbers = #tpu.dot_dimension_numbers<[1], [0], [0], [1], [0, 0, 1, 1], [], []>} : vector<4x10xbf16>, vector<10x20xbf16>, vector<4x20xf32> -> vector<4x20xf32>
    %10 = arith.addf %2, %9 : vector<4x20xf32>
    %c0_10 = arith.constant 0 : index
    %c0_11 = arith.constant 0 : index
    %c0_12 = arith.constant 0 : index
    %11 = vector.load %arg1[%c0_10, %c0_11, %c0_12] : memref<1x8x40xbf16, #tpu.memory_space<vmem>>, vector<1x8x40xbf16>
    %12 = vector.shape_cast %11 : vector<1x8x40xbf16> to vector<8x40xbf16>
    %13 = arith.extf %12 : vector<8x40xbf16> to vector<8x40xf32>
    %c0_13 = arith.constant 0 : index
    %c0_14 = arith.constant 0 : index
    %14 = vector.load %arg6[%c0_13, %c0_14] : memref<8x4xbf16, #tpu.memory_space<vmem>>, vector<8x4xbf16>
    %15 = arith.truncf %10 : vector<4x20xf32> to vector<4x20xbf16>
    %cst_15 = arith.constant dense<0.000000e+00> : vector<8x20xf32>
    %16 = tpu.matmul %14, %15, %cst_15 {dimension_numbers = #tpu.dot_dimension_numbers<[1], [0], [0], [1], [0, 0, 1, 1], [], []>} : vector<8x4xbf16>, vector<4x20xbf16>, vector<8x20xf32> -> vector<8x20xf32>
    %c0_16 = arith.constant 0 : index
    %c0_17 = arith.constant 0 : index
    %17 = vector.load %arg7[%c0_16, %c0_17] : memref<20x40xbf16, #tpu.memory_space<vmem>>, vector<20x40xbf16>
    %18 = arith.truncf %16 : vector<8x20xf32> to vector<8x20xbf16>
    %cst_18 = arith.constant dense<0.000000e+00> : vector<8x40xf32>
    %19 = tpu.matmul %18, %17, %cst_18 {dimension_numbers = #tpu.dot_dimension_numbers<[1], [0], [0], [1], [0, 0, 1, 1], [], []>} : vector<8x20xbf16>, vector<20x40xbf16>, vector<8x40xf32> -> vector<8x40xf32>
    %20 = arith.addf %13, %19 : vector<8x40xf32>
    %c0_19 = arith.constant 0 : index
    %c0_20 = arith.constant 0 : index
    %21 = vector.load %arg8[%c0_19, %c0_20] : memref<40x320xbf16, #tpu.memory_space<vmem>>, vector<40x320xbf16>
    %22 = arith.truncf %20 : vector<8x40xf32> to vector<8x40xbf16>
    %cst_21 = arith.constant dense<0.000000e+00> : vector<8x320xf32>
    %23 = tpu.matmul %22, %21, %cst_21 {dimension_numbers = #tpu.dot_dimension_numbers<[1], [0], [0], [1], [0, 0, 1, 1], [], []>} : vector<8x40xbf16>, vector<40x320xbf16>, vector<8x320xf32> -> vector<8x320xf32>
    %24 = arith.truncf %23 : vector<8x320xf32> to vector<8x320xbf16>
    %c0_22 = arith.constant 0 : index
    %c0_23 = arith.constant 0 : index
    %c0_24 = arith.constant 0 : index
    %25 = vector.load %arg9[%c0_22, %c0_23, %c0_24] : memref<1x8x320xbf16, #tpu.memory_space<vmem>>, vector<1x8x320xbf16>
    %26 = vector.shape_cast %25 : vector<1x8x320xbf16> to vector<8x320xbf16>
    %27 = vector.shape_cast %24 : vector<8x320xbf16> to vector<1x8x320xbf16>
    tpu.vector_store %arg9[%c0_22, %c0_23, %c0_24], %27 {strides = array<i32>} : memref<1x8x320xbf16, #tpu.memory_space<vmem>>, vector<1x8x320xbf16>,
    return
  }
  func.func @transform_0(%arg0: i32) -> (i32, i32, i32) {
    %c0_i32 = arith.constant 0 : i32
    %c0_i32_0 = arith.constant 0 : i32
    %c0_i32_1 = arith.constant 0 : i32
    return %arg0, %c0_i32, %c0_i32_0 : i32, i32, i32
  }
  func.func @transform_1(%arg0: i32) -> (i32, i32, i32) {
    %c0_i32 = arith.constant 0 : i32
    %c0_i32_0 = arith.constant 0 : i32
    %c0_i32_1 = arith.constant 0 : i32
    return %arg0, %c0_i32, %c0_i32_0 : i32, i32, i32
  }
  func.func @transform_2(%arg0: i32) -> (i32, i32, i32) {
    %c0_i32 = arith.constant 0 : i32
    %c0_i32_0 = arith.constant 0 : i32
    %c0_i32_1 = arith.constant 0 : i32
    return %arg0, %c0_i32, %c0_i32_0 : i32, i32, i32
  }
  func.func @transform_3(%arg0: i32) -> (i32, i32) {
    %c0_i32 = arith.constant 0 : i32
    %c0_i32_0 = arith.constant 0 : i32
    %c0_i32_1 = arith.constant 0 : i32
    return %c0_i32, %c0_i32_0 : i32, i32
  }
  func.func @transform_4(%arg0: i32) -> (i32, i32) {
    %c0_i32 = arith.constant 0 : i32
    %c0_i32_0 = arith.constant 0 : i32
    %c0_i32_1 = arith.constant 0 : i32
    return %c0_i32, %c0_i32_0 : i32, i32
  }
  func.func @transform_5(%arg0: i32) -> (i32, i32) {
    %c0_i32 = arith.constant 0 : i32
    %c0_i32_0 = arith.constant 0 : i32
    %c0_i32_1 = arith.constant 0 : i32
    return %c0_i32, %c0_i32_0 : i32, i32
  }
  func.func @transform_6(%arg0: i32) -> (i32, i32) {
    %c0_i32 = arith.constant 0 : i32
    %c0_i32_0 = arith.constant 0 : i32
    %c0_i32_1 = arith.constant 0 : i32
    return %c0_i32, %c0_i32_0 : i32, i32
  }
  func.func @transform_7(%arg0: i32) -> (i32, i32) {
    %c0_i32 = arith.constant 0 : i32
    %c0_i32_0 = arith.constant 0 : i32
    %c0_i32_1 = arith.constant 0 : i32
    return %c0_i32, %c0_i32_0 : i32, i32
  }
  func.func @transform_8(%arg0: i32) -> (i32, i32, i32) {
    %c0_i32 = arith.constant 0 : i32
    %c0_i32_0 = arith.constant 0 : i32
    %c0_i32_1 = arith.constant 0 : i32
    return %arg0, %c0_i32, %c0_i32_0 : i32, i32, i32
  }
}

</mosaic_0001>

<bundles_post_ra>
// kernel: tpu_custom_call.1
= control target key start
LH: loop header
LB: loop body
LE: loop exit
PB: predicated region body
PF: predicated region fallthrough
CT: control target
= control target key end

     0   :  { %s1497_s0 = inlined_call_operand.hbm [shape: bf16[2,8,40], index: 0, kind: input, shape index: {}]   ;;  %s1498_s1 = inlined_call_operand.vmem [shape: bf16[2,4,20], index: 1, kind: input, shape index: {}]   ;;  %s1499_s2 = inlined_call_operand.vmem [shape: bf16[2,2,10], index: 2, kind: input, shape index: {}]   ;;  %s1500_s3 = inlined_call_operand.vmem [shape: bf16[4,2], index: 3, kind: input, shape index: {}]   ;;  %s1501_s4 = inlined_call_operand.hbm [shape: bf16[10,20], index: 4, kind: input, shape index: {}]   ;;  %s1502_s5 = inlined_call_operand.vmem [shape: bf16[8,4], index: 5, kind: input, shape index: {}]   ;;  %s1503_s6 = inlined_call_operand.vmem [shape: bf16[20,40], index: 6, kind: input, shape index: {}]   ;;  %s1504_s7 = inlined_call_operand.hbm [shape: bf16[40,320], index: 7, kind: input, shape index: {}]   ;;  %s1505_s8 = inlined_call_operand.hbm [shape: bf16[2,8,320], index: 8, kind: output, shape index: {}]  }
   0x1   :  { %1510 = sst [smem:[#allocation13_spill]] %s1501_s4 }
   0x2   :  { %1511 = sst [smem:[#allocation14_spill]] %s1504_s7 }
   0x3   :  { %13 = vsyncpa [#allocation3], 0 }
   0x4   :  { %15 = vsyncpa [#allocation3 + $0x1], 0 }
   0x5   :  { %16 = vsyncpa [#allocation6], 0 }
   0x6   :  { %17 = vsyncpa [#allocation4], 0 }
   0x7   :  { %19 = vsyncpa [#allocation4 + $0x1], 0  ;;  %s1274_s27 = smov 0   ;;  %s1276_s28 = smov 0  }
   0x8   :  { %s1278_s29 = smov 0   ;;  %s1280_s30 = smov 0  }
   0x9 LB: > { %s1295_s9 = sadd.s32 4294967295, %s1216_s30   ;;  %s891_s10 = sadd.s32 4294967294, %s1216_s30   ;;  %s1216_s30 = sphi %s1280_s30, %s1533_s30   ;;  %s1212_s29 = sphi %s1278_s29, %s1532_s29   ;;  %s1208_s28 = sphi %s1276_s28, %s1531_s28   ;;  %s1204_s27 = sphi %s1274_s27, %s1530_s27  }
   0xa   : > { %p45_p0 = scmp.ne.s32.totalorder %s1208_s28, %s1204_s27  ;;  %p1506_p1 = scmp.eq.s32.totalorder %s1295_s9, 0 }
   0xb   : > { %p232_p3 = scmp.eq.s32.totalorder %s891_s10, 1  ;;  %p892_p5 = scmp.ge.s32.totalorder %s1216_s30, 1 }
   0xc   : > { %p1304_p4 = por %p1506_p1, %p45_p0  ;;  %p239_p7 = scmp.lt.s32.totalorder %s1216_s30, 3 }
   0xd   : > { %p1309_p6 = por %p232_p3, %p45_p0  ;;  %s1218_s14 = smov [#allocation5]  }
   0xe   : > { %s1512_s11 = scalar_select %p1304_p4, 1, 0 }
   0xf   : > { %s1513_s12 = scalar_select %p1309_p6, 1, 0 }
  0x10   : > { %p1314_p8 = pnand %p892_p5, %p239_p7  ;;  %s254_s15 = sshll.u32 %s1218_s14, 4  ;;  %s255_s15 = int_to_ptr.vmem [resolvable:$true] %s254_s15 }
  0x11   : > { %s1219_s17 = smov [#allocation7]   ;;  %s1079_s19 = scalar_lea.vmem %s255_s15, 128 }
  0x12   : > { %s1514_s13 = scalar_select %p1314_p8, 1, 0 }
  0x13   : > { %p992_p9 = pneg %p1314_p8  ;;  %s273_s18 = sshll.u32 %s1219_s17, 4  ;;  %s274_s18 = int_to_ptr.vmem [resolvable:$true] %s273_s18 }
  0x14   : > { %p1080_p13 = scmp.ne.s32.totalorder %s255_s15, %s1079_s19  ;;  %p1087_p5 = scmp.lt.s32.totalorder %s255_s15, %s255_s15 }
  0x15   : > { %p1323_p11 = pnand %p992_p9, %p1506_p1  ;;  %p1088_p7 = scmp.lt.s32.totalorder %s1079_s19, %s1079_s19 }
  0x17   : > { %p1070_p12 = pneg %p1323_p11  ;;  %p1089_p10 = por %p1088_p7, %p1087_p5 }
  0x19   : > { %p1082_p0 = pnand %p1080_p13, %p1070_p12 }
  0x1b   : > { %p1083_p3 = pneg %p1082_p0 }
  0x1d   : > { %p1090_p9 = pnand %p1089_p10, %p1083_p3 }
  0x1f   : > { %1093 = shalt.err (!%p1090_p9)
}
  0x20   : > { %s1220_s20 = smov 64   ;;  %s1221_s21 = smov 4  }
  0x21   : > { %s1516_s4 = sld [smem:[#allocation13_spill]]  ;;  %s1105_s24 = scalar_lea.vmem %s274_s18, 960 }
  0x22   : > { %p1106_p1 = scmp.ne.s32.totalorder %s274_s18, %s1105_s24  ;;  %p1113_p2 = scmp.lt.s32.totalorder %s274_s18, %s274_s18 }
  0x23   : > { %p1114_p6 = scmp.lt.s32.totalorder %s1105_s24, %s1105_s24 }
  0x24   : > { %p1108_p13 = pnand %p1106_p1, %p1070_p12 }
  0x25   : > { %p1115_p5 = por %p1114_p6, %p1113_p2 }
  0x26   : > { %p1109_p0 = pneg %p1108_p13 }
  0x27   : > { %995 = dma.hbm_to_vmem [thread:$0]  (!%p1323_p11), %s1516_s4, 128, %s255_s15, [#allocation6], %s1220_s20, %s1220_s20, %s1221_s21  }
  0x28   : > { %p1116_p10 = pnand %p1115_p5, %p1109_p0 }
  0x2a   : > { %1119 = shalt.err (!%p1116_p10)
}
  0x2b   : > { %s1222_s25 = smov 192   ;;  %s1223_s26 = smov 12  }
  0x2c   : > { %s1517_s7 = sld [smem:[#allocation14_spill]]  ;;  %s1346_s15 = sadd.s32 1, %s1216_s30  }
  0x2d   : > { %s29_s17 = ssub.s32 %s1216_s30, %s1346_s15  ;;  %s32_s19 = sadd.s32 1, %s1212_s29 }
  0x2e   : > { %p30_p1 = scmp.eq.s32.totalorder %s29_s17, 0  ;;  %p39_p2 = scmp.ne.s32.totalorder %s1212_s29, %s1208_s28 }
  0x2f   : > { %p40_p6 = scmp.eq.s32.totalorder %s1216_s30, 0  ;;  %p1519_p3 = scmp.eq.s32.totalorder %s1295_s9, 1 }
  0x30   : > { %s1355_s20 = scalar_select %p30_p1, %s1212_s29, %s32_s19  }
  0x31   : > { %p41_p12 = por %p40_p6, %p39_p2  ;;  %p1359_p7 = por %p1519_p3, %p39_p2 }
  0x32   : > { %998 = dma.hbm_to_vmem [thread:$0]  (!%p1323_p11), %s1517_s7, 960, %s274_s18, [#allocation6], %s1222_s25, %s1222_s25, %s1223_s26  }
  0x33   : > { %1518 = sst [smem:[#allocation12_spill]] %s1355_s20  ;;  %p1009_p9 = scmp.lt.s32.totalorder %s1216_s30, 2 }
  0x34   : > { %s1520_s21 = scalar_select %p1359_p7, 1, 0 }
  0x35   : > { %s287_s16 = sand.u32 1, %s1212_s29   ;;  %s897_s18 = sshll.u32 %s1216_s30, 6 }
  0x36   : > { %s896_s22 = sshll.u32 %s287_s16, 2  ;;  %s1369_s25 = scalar_lea.hbm %s1497_s0, %s897_s18 }
  0x37   : > { %s291_s26 = scalar_lea.vmem [#allocation2], %s896_s22  ;;  %p1371_p11 = pnand %p1009_p9, %p41_p12 }
  0x38   : > { %s298_s10 = sshll.u32 %s291_s26, 4  ;;  %s288_s17 = scalar_lea.sflag [#allocation3], %s287_s16  ;;  %s299_s10 = int_to_ptr.vmem [resolvable:$true] %s298_s10 }
  0x39   : > { %s1120_s19 = scalar_lea.hbm %s1369_s25, 64  ;;  %p1122_p0 = pneg %p1371_p11 }
  0x3a   : > { %p1121_p13 = scmp.ne.s32.totalorder %s1369_s25, %s1120_s19  ;;  %s1125_s24 = scalar_lea.hbm %s1497_s0, 128 }
  0x3b   : > { %p1126_p1 = scmp.lt.s32.totalorder %s1369_s25, %s1497_s0  ;;  %p1127_p2 = scmp.lt.s32.totalorder %s1125_s24, %s1120_s19 }
  0x3c   : > { %p1123_p5 = pnand %p1122_p0, %p1121_p13 }
  0x3d   : > { %p1128_p6 = por %p1127_p2, %p1126_p1 }
  0x3e   : > { %p1124_p10 = pneg %p1123_p5 }
  0x40   : > { %p1129_p12 = pnand %p1128_p6, %p1124_p10 }
  0x42   : > { %1132 = shalt.err (!%p1129_p12)
}
  0x43   : > { %s1133_s26 = scalar_lea.vmem %s299_s10, 64  ;;  %s1224_s16 = smov [#allocation2]  }
  0x44   : > { %p1134_p3 = scmp.ne.s32.totalorder %s299_s10, %s1133_s26  ;;  %s1138_s7 = sshll.u32 %s1224_s16, 4  ;;  %s1139_s7 = int_to_ptr.vmem [resolvable:$false] %s1138_s7 }
  0x45   : > { %s1140_s20 = scalar_lea.vmem %s1139_s7, 128  ;;  %p1141_p13 = scmp.lt.s32.totalorder %s299_s10, %s1139_s7 }
  0x46   : > { %p1136_p9 = pnand %p1134_p3, %p1122_p0  ;;  %p1142_p5 = scmp.lt.s32.totalorder %s1140_s20, %s1133_s26 }
  0x48   : > { %p1137_p7 = pneg %p1136_p9  ;;  %p1143_p4 = por %p1142_p5, %p1141_p13 }
  0x4a   : > { %p1144_p8 = pnand %p1143_p4, %p1137_p7 }
  0x4c   : > { %1147 = shalt.err (!%p1144_p8)
}
  0x4d   : > { %1002 = dma.hbm_to_vmem [thread:$0]  (!%p1371_p11), %s1369_s25, 64, %s299_s10, %s288_s17  }
  0x4e   : > { %p1522_p10 = scmp.ne.s32.totalorder %s1514_s13, 0 }
  0x4f   : > { %s1392_s4 = sand.u32 (!%p1522_p10), 1, %s1208_s28   ;;  %p1523_p0 = scmp.ne.s32.totalorder (!%p1522_p10), %s1512_s11, 0 }
  0x50   : > { %320 = sbr.rel (%p1522_p10) target bundleno = 1098 (0x44a), region = 52  ;;  %s899_s19 = sshll.u32 (!%p1522_p10), %s1392_s4, 2 }
  0x51   : > { %s323_s18 = scalar_lea.sflag (!%p1522_p10), [#allocation3], %s1392_s4  ;;  %s1396_s7 = scalar_lea.vmem (!%p1522_p10), [#allocation2], %s899_s19 }
  0x55   : > { %1191 = dma.done.wait (%p1523_p0), %s323_s18, 64  }
  0x56   : > { %1193 = vsyncadd (%p1523_p0), %s323_s18, 4294967232  ;;  %p1524_p4 = scmp.eq.s32.totalorder %s1295_s9, 0 }
  0x58   : > { %1195 = dma.done.wait (%p1524_p4), [#allocation6], 1088   ;;  %p1525_p8 = pmov %p1524_p4 }
  0x59   : > { %p374_p7 = scmp.lt.s32.totalorder %s1295_s9, 1  ;;  %v1225_v0 = vmov 0.0   ;;  %vm1226_vm0 = vmmov 0   ;;  %vm390_vm1 = vcmask 1040384   ;;  %vm386_vm2 = vcmask 15360   ;;  %v1056_v23 = vld [vmem:[%s1503_s6] sm:$0xff]  }
  0x5a   : > { %1197 = vsyncadd (%p1525_p8), [#allocation6], 4294966208  ;;  %942 = vmatprep.subr.bf16.mxu0 %v1225_v0  ;;  %944 = vmatprep.mubr.msk.bf16.mxu0 %vm1226_vm0, %v1225_v0  ;;  %v384_v2 = vld [vmem:[%s1500_s3] sm:$0x3]  ;;  %v1054_v4 = vld [vmem:[#allocation5] sm:$0x1f]  }
  0x5b   : > { %s1411_s13 = scalar_select %p374_p7, %s1295_s9, 1  ;;  %948 = vmatprep.subr.bf16.mxu1 %v1225_v0  ;;  %950 = vmatprep.mubr.msk.bf16.mxu1 %vm1226_vm0, %v1225_v0  ;;  %vm446_vm3 = vcmask 1044480   ;;  %vm442_vm4 = vcmask 80896   ;;  %v1055_v11 = vld [vmem:[%s1503_s6 + $0x8] ss:$0 sps:$4 sm:$0x33]  }
  0x5c   : > { %v448_v5 = vsel %vm446_vm3, %v1054_v4, 0  ;;  %vm499_vm5 = vcmask 1041408   ;;  %v493_v22 = vld [vmem:[%s1502_s5] sm:$0xf]  ;;  %vm495_vm6 = vcmask 31744   ;;  %vm659_vm7 = vcmask 1043456  }
  0x5d   : > { %s380_s25 = scalar_lea.vmem %s1499_s2, %s1411_s13  ;;  %949 = vmatpush3.bf16.msra.mxu1 %v448_v5  ;;  %v561_v12 = vsel %vm499_vm5, %v1055_v11, 0  ;;  %s902_s24 = sshll.u32 %s1411_s13, 1  ;;  %v612_v24 = vld [vmem:[#allocation7 + $0x30] sm:$0xff]  ;;  %v1062_v27 = vld [vmem:[#allocation7 + $0x1c] ss:$12 sps:$4 sm:$0xff]   ;;  %vm556_vm8 = vcmask 162816  }
  0x5e   : > { %v385_v1 = vld [vmem:[%s380_s25] sm:$0x1]  ;;  %960 = vmatprep.subr.bf16.mxu1 %v1225_v0  ;;  %s377_s16 = scalar_lea.vmem %s1498_s1, %s902_s24  ;;  %v917_v25 = vcombine.high %v612_v24, %v612_v24  ;;  %v916_v26 = vcombine.low %v612_v24, %v612_v24  ;;  %v1060_v29 = vld [vmem:[#allocation7 + $0x18] ss:$12 sps:$4 sm:$0xff]   ;;  %v1063_v36 = vld [vmem:[#allocation7 + $0x20] ss:$12 sps:$4 sm:$0xff]  }
  0x5f   : > { %v392_v3 = vsel %vm390_vm1, %v385_v1, 0  ;;  %v382_v13 = vld [vmem:[%s377_s16] sm:$0x3]  ;;  %v1059_v30 = vld [vmem:[#allocation7 + $0x38] ss:$0 sps:$4 sm:$0xff]   ;;  %v1227_v41 = vmov 0  }
  0x60   : > { %943 = vmatpush3.bf16.msra.mxu0 %v392_v3  ;;  %v383_v14 = vunpack.c.l.bf16 %v382_v13  ;;  %v661_v28 = vsel %vm659_vm7, %v916_v26, 0  ;;  %v667_v33 = vsel %vm659_vm7, %v1059_v30, 0  ;;  %v1066_v38 = vld [vmem:[#allocation7 + $0x4] ss:$12 sps:$4 sm:$0xff]   ;;  %v1064_v39 = vld [vmem:[#allocation7] ss:$12 sps:$4 sm:$0xff]  }
  0x61   : > { %954 = vmatprep.subr.bf16.mxu0 %v1225_v0  ;;  %v1067_v40 = vld [vmem:[#allocation7 + $0x8] ss:$12 sps:$4 sm:$0xff]   ;;  %vm655_vm9 = vcmask 326656   ;;  %s978_s20 = smul.u32 12, %s1392_s4  ;;  %vm764_vm10 = vcmask 519168   ;;  %p1526_p1 = scmp.ne.s32.totalorder %s1520_s21, 0 }
  0x62   : > { %v491_v42 = vld [vmem:[%s1396_s7] sm:$0xf]  ;;  %s979_s25 = smul.u32 192, %s1295_s9  ;;  %s767_s9 = scalar_lea.sflag [#allocation4], %s1392_s4 }
  0x63   : > { %945 = vmatmul.mubr.msk.bf16.vlgmr.msra.gmra.mxu0 %vm386_vm2, %v384_v2  ;;  %v492_v43 = vunpack.c.l.bf16 %v491_v42  ;;  %s373_s10 = scalar_lea.vmem [#allocation8], %s978_s20  ;;  %s1228_s22 = smov [#allocation8]  }
  0x64   : > { %956 = vmatprep.mubr.msk.bf16.mxu0 %vm1226_vm0, %v1225_v0  ;;  %s781_s14 = sshll.u32 %s373_s10, 4  ;;  %s1454_s23 = scalar_lea.hbm %s1505_s8, %s979_s25  ;;  %s1456_s14 = int_to_ptr.vmem [resolvable:$true] %s781_s14 }
  0x65   : > { %s1148_s24 = scalar_lea.vmem %s1456_s14, 192  ;;  %s1152_s26 = sshll.u32 %s1228_s22, 4  ;;  %s1153_s26 = int_to_ptr.vmem [resolvable:$false] %s1152_s26 }
  0x66   : > { %p1149_p11 = scmp.ne.s32.totalorder %s1456_s14, %s1148_s24  ;;  %s1154_s16 = scalar_lea.vmem %s1153_s26, 384 }
  0x67   : > { %p1155_p12 = scmp.lt.s32.totalorder %s1456_s14, %s1153_s26  ;;  %p1156_p3 = scmp.lt.s32.totalorder %s1154_s16, %s1148_s24 }
  0x68   : > { %p1150_p2 = pnand %p1149_p11, %p1526_p1 }
  0x69   : > { %p1157_p9 = por %p1156_p3, %p1155_p12 }
  0x6a   : > { %p1151_p6 = pneg %p1150_p2 }
  0x6c   : > { %p1158_p13 = pnand %p1157_p9, %p1151_p6 }
 0x123   : > { %v428_v6 = vpop.f32.mrf.mxu0 }
 0x124   : > { %v436_v7 = vpack.c.bf16 %v428_v6, %v428_v6 }
 0x125   : > { %v946_v8 = vpop.f32.mrf.mxu0 }
 0x126   : > { %951 = vmatmul.mubr.msk.bf16.vlgmr.msra.gmra.mxu1 %vm442_vm4, %v436_v7 }
 0x127   : > { %v431_v9 = vpop.f32.mrf.mxu0  ;;  %964 = vmatprep.mubr.msk.bf16.mxu1 %vm1226_vm0, %v1225_v0  ;;  %961 = vmatpush3.bf16.msra.mxu1 %v561_v12 }
 0x128   : > { %962 = vmatprep.subr.bf16.mxu1 %v1225_v0 }
 0x129   : > { %v947_v10 = vpop.f32.mrf.mxu0 }
 0x12b   : > { %963 = vmatpush3.bf16.msra.mxu1 %v1056_v23 }
 0x12c   : > { %968 = vmatprep.subr.bf16.mxu1 %v1225_v0 }
 0x1e6   : > { %v484_v15 = vpop.f32.mrf.mxu1 }
 0x1e7   : > { %v490_v16 = vadd.f32 %v484_v15, %v383_v14 }
 0x1e8   : > { %v952_v17 = vpop.f32.mrf.mxu1 }
 0x1e9   : > { %v494_v18 = vpack.c.bf16 %v490_v16, %v490_v16 }
 0x1ea   : > { %v487_v19 = vpop.f32.mrf.mxu1 }
 0x1eb   : > { %v501_v20 = vsel %vm499_vm5, %v494_v18, 0 }
 0x1ec   : > { %v953_v21 = vpop.f32.mrf.mxu1  ;;  %955 = vmatpush3.bf16.msra.mxu0 %v501_v20 }
 0x1ed   : > { %919 = vmatprep.subr.msk.bf16.mxu0 %vm659_vm7, %v917_v25 }
 0x1ef   : > { %957 = vmatmul.mubr.msk.bf16.vlgmr.msra.gmra.mxu0 %vm495_vm6, %v493_v22 }
 0x1f0   : > { %680 = vmatpush1.bf16.msra.mxu0 %v661_v28  ;;  %701 = vmatprep.mubr.bf16.mxu0 %v1227_v41 }
 0x1f1   : > { %681 = vmatprep.subr.bf16.mxu0 %v1062_v27 }
 0x1f4   : > { %682 = vmatpush1.bf16.msra.mxu0 %v1060_v29 }
 0x1f5   : > { %683 = vmatprep.subr.bf16.mxu0 %v1066_v38 }
 0x1f8   : > { %684 = vmatpush1.bf16.msra.mxu0 %v1064_v39 }
 0x2af   : > { %v537_v31 = vpop.f32.mrf.mxu0 }
 0x2b0   : > { %v546_v32 = vpack.c.bf16 %v537_v31, %v537_v31 }
 0x2b1   : > { %v958_v34 = vpop.f32.mrf.mxu0 }
 0x2b2   : > { %965 = vmatmul.mubr.msk.bf16.vlgmr.msra.gmra.mxu1 %vm556_vm8, %v546_v32 }
 0x2b3   : > { %v540_v35 = vpop.f32.mrf.mxu0  ;;  %969 = vmatpush3.bf16.msra.mxu1 %v667_v33  ;;  %974 = vmatprep.mubr.msk.bf16.mxu1 %vm1226_vm0, %v1225_v0 }
 0x2b4   : > { %970 = vmatprep.subr.bf16.mxu1 %v1225_v0 }
 0x2b5   : > { %v959_v37 = vpop.f32.mrf.mxu0 }
 0x2b7   : > { %971 = vmatpush3.bf16.msra.mxu1 %v1063_v36 }
 0x2b8   : > { %972 = vmatprep.subr.bf16.mxu1 %v1225_v0 }
 0x2bb   : > { %973 = vmatpush3.bf16.msra.mxu1 %v1067_v40 }
 0x372   : > { %v597_v44 = vpop.f32.mrf.mxu1 }
 0x373   : > { %v603_v45 = vadd.f32 %v597_v44, %v492_v43 }
 0x374   : > { %v966_v46 = vpop.f32.mrf.mxu1 }
 0x375   : > { %v614_v47 = vpack.c.bf16 %v603_v45, %v603_v45 }
 0x376   : > { %v600_v48 = vpop.f32.mrf.mxu1 }
 0x377   : > { %920 = vmatmul.mubr.msk.bf16.vlgmr.msra.gmra.mxu0 %vm655_vm9, %v614_v47  ;;  %975 = vmatmul.mubr.msk.bf16.vlgmr.msra.gmra.mxu1 %vm655_vm9, %v614_v47 }
 0x378   : > { %v967_v49 = vpop.f32.mrf.mxu1 }
 0x437   : > { %v703_v50 = vpop.f32.mrf.mxu0  ;;  %v744_v51 = vpop.f32.mrf.mxu1 }
 0x438   : > { %v928_v52 = vpack.c.bf16 %v744_v51, %v744_v51 }
 0x439   : > { %v705_v53 = vpop.f32.mrf.mxu0  ;;  %v976_v54 = vpop.f32.mrf.mxu1 }
 0x43a   : > { %v927_v55 = vpack.c.bf16 %v705_v53, %v703_v50  ;;  %765 = vst.msk [vmem:[%s373_s10 + $0x8] sm:$0xf] %vm764_vm10, %v928_v52 }
 0x43b   : > { %v707_v56 = vpop.f32.mrf.mxu0  ;;  %v747_v57 = vpop.f32.mrf.mxu1 }
 0x43c   : > { %763 = vst [vmem:[%s373_s10] sm:$0xff] %v927_v55 }
 0x43d   : > { %v708_v58 = vpop.f32.mrf.mxu0  ;;  %v977_v59 = vpop.f32.mrf.mxu1 }
 0x43e   : > { %1161 = shalt.err (!%p1158_p13)
}
 0x43f   : > { %s1162_s19 = scalar_lea.hbm %s1454_s23, 192  ;;  %s1166_s13 = scalar_lea.hbm %s1505_s8, 384 }
 0x440   : > { %p1163_p5 = scmp.ne.s32.totalorder %s1454_s23, %s1162_s19  ;;  %p1167_p4 = scmp.lt.s32.totalorder %s1454_s23, %s1505_s8 }
 0x441   : > { %p1168_p8 = scmp.lt.s32.totalorder %s1166_s13, %s1162_s19 }
 0x442   : > { %p1164_p10 = pnand %p1163_p5, %p1526_p1 }
 0x443   : > { %p1169_p7 = por %p1168_p8, %p1167_p4 }
 0x444   : > { %p1165_p0 = pneg %p1164_p10 }
 0x446   : > { %p1170_p11 = pnand %p1169_p7, %p1165_p0 }
 0x448   : > { %1173 = shalt.err (!%p1170_p11)
}
 0x449   : > { %990 = dma.vmem_to_hbm [thread:$0]  (%p1526_p1), %s1456_s14, 192, %s1454_s23, %s767_s9  }
 0x44a PF: > { %s793_s25 = sand.u32 1, %s1204_s27   ;;  %p1527_p2 = scmp.ne.s32.totalorder %s1513_s12, 0 }
 0x44b   : > { %p1528_p6 = scmp.ge.s32.totalorder %s1216_s30, 2  ;;  %s794_s10 = scalar_lea.sflag [#allocation4], %s793_s25 }
 0x44d   : > { %p1004_p12 = pnand %p1528_p6, %p1527_p2 }
 0x44f   : > { %p1005_p3 = pneg %p1004_p12 }
 0x451   : > { %1199 = dma.done.wait (%p1005_p3), %s794_s10, 192  }
 0x452   : > { %1201 = vsyncadd (%p1005_p3), %s794_s10, 4294967104  ;;  %s1529_s7 = sld [smem:[#allocation12_spill]]  ;;  %p22_p9 = scmp.ge.s32.totalorder %s1346_s15, 4  }
 0x453   : > { %s1530_s27 = smov %s1208_s28  ;;  %s1531_s28 = smov %s1212_s29 }
 0x454   : > { %s1533_s30 = smov %s1346_s15  ;;  %24 = sbr.rel (!%p22_p9) target bundleno = 9 (0x9), region = 111 }
 0x458   : > { %s1532_s29 = smov %s1529_s7 }
 0x459   :  { %799 = vsyncpa [#allocation3], 1 }
 0x45a   :  { %801 = vsyncpa [#allocation3 + $0x1], 1 }
 0x45b   :  { %802 = vsyncpa [#allocation6], 1 }
 0x45c   :  { %803 = vsyncpa [#allocation4], 1 }
 0x45d   :  { %805 = vsyncpa [#allocation4 + $0x1], 1 }

</bundles_post_ra>
